<compile_context>
chip_gen: v6e
topology: v6e:2x2x1
jax: 0.10.0
libtpu: 0.0.40
codegen_flags: <defaults>
</compile_context>

<pallas_src>
import jax
import jax.numpy as jnp
from jax import lax
from jax.experimental import pallas as pl
from jax.experimental.pallas import tpu as pltpu


def _sublane_multiple(dtype) -> int:
    """Minimum second-to-last block dim for a dtype (8/16/32 for 4/2/1 bytes)."""
    itemsize = jnp.dtype(dtype).itemsize
    return {4: 8, 2: 16, 1: 32}.get(itemsize, 8)


def _make_embedding_kernel(T: int, k: int, D: int):
    """Build the per-block gather kernel.

    T: tokens per grid step; k: tokens packed along the lane axis (k*D == 128
    when packing, else k == 1); D: embedding dim.
    """
    Tr = T // k  # output rows per block (each row holds k tokens)

    def kernel(idx_ref, w_ref, o_ref):
        # idx_ref: (N_pad,) int32 token ids in SMEM (scalar prefetch).
        # w_ref:   (V, D) table, VMEM-resident (constant block index).
        # o_ref:   (Tr, k*D) lane-dense output block.
        base = pl.program_id(0) * T

        def row_body(r, carry):
            parts = []
            for j in range(k):                          # static, k is small
                tok = idx_ref[base + r * k + j]         # scalar SMEM read
                parts.append(w_ref[pl.ds(tok, 1), :])   # (1, D) dynamic-row gather
            row = parts[0] if k == 1 else jnp.concatenate(parts, axis=-1)
            o_ref[pl.ds(r, 1), :] = row                 # full-lane (1, k*D) store
            return carry

        lax.fori_loop(0, Tr, row_body, None)

    return kernel


def embedding_forward(x, weight, *, block_tokens=256):
    """Pallas embedding lookup.

    Args:
      x:      (B, S) integer token ids, 0 <= x < vocab_size.
      weight: (V, D) float embedding table.
      block_tokens: target tokens per grid step (rounded to layout constraints).
    Returns:
      (B, S, D) embeddings with the dtype of `weight`.
    """
    B, S = x.shape
    V, D = weight.shape
    N = B * S
    itemsize = jnp.dtype(weight.dtype).itemsize
    table_bytes = V * D * itemsize

    # Resident-table cap derived from device VMEM (64 MiB on v7x, 128 MiB on
    # v5e/v6e).  TODO(synk): for tables above the cap, switch to a per-row HBM
    # gather (memory_space=pl.ANY + manual make_async_copy double-buffering)
    # instead of asserting.
    try:
        vmem_capacity = pltpu.get_tpu_info().vmem_capacity_bytes
    except Exception:
        vmem_capacity = 64 * 1024 * 1024
    resident_cap = min(32 * 1024 * 1024, vmem_capacity // 4)
    assert table_bytes <= resident_cap, (
        f"embedding table ({table_bytes} B) too large for the VMEM-resident "
        f"path (cap {resident_cap} B)")

    # Lane packing: fold k tokens into the 128-lane axis when D < 128.
    k = 128 // D if (D < 128 and 128 % D == 0) else 1
    m = _sublane_multiple(weight.dtype)   # sublane multiple for the out dtype
    t_mult = k * m                        # keeps Tr = T // k a multiple of m

    # Token tile: big enough to amortize per-step overhead, shrunk for small N.
    T = max(t_mult, min(block_tokens, pl.cdiv(N, 2) if N > t_mult else t_mult))
    T = ((T + t_mult - 1) // t_mult) * t_mult
    G = pl.cdiv(N, T)
    N_pad = G * T
    Tr = T // k

    # Ids live in SMEM via scalar prefetch (1-D SMEM pads to next power of 2).
    # TODO(synk): for very large N, tile the ids per grid step instead.
    assert N_pad <= 128 * 1024, "too many tokens for the SMEM scalar-prefetch path"

    # Clamp ids (spec guarantees validity; clamping makes bad/padded ids
    # harmless: they read row 0 and padded rows are sliced off afterwards).
    idx = jnp.clip(x.reshape(-1).astype(jnp.int32), 0, V - 1)
    if N_pad != N:
        idx = jnp.pad(idx, (0, N_pad - N))

    # VMEM budget: double-buffered table (constant block, still budgeted 2x to
    # stay safe with default pipelining) + double-buffered output block.
    out_block_bytes = T * D * itemsize
    vmem_limit = int(min(
        100 * 1024 * 1024,
        max(4 * 1024 * 1024,
            2 * table_bytes + 2 * out_block_bytes + (1 << 20))))

    kernel = _make_embedding_kernel(T, k, D)

    out_packed = pl.pallas_call(
        kernel,
        out_shape=jax.ShapeDtypeStruct((N_pad // k, k * D), weight.dtype),
        grid_spec=pltpu.PrefetchScalarGridSpec(
            num_scalar_prefetch=1,
            grid=(G,),
            in_specs=[
                # Full table, VMEM-resident: constant block index, fetched once.
                pl.BlockSpec((V, D), lambda g, idx_ref: (0, 0)),
            ],
            out_specs=pl.BlockSpec((Tr, k * D), lambda g, idx_ref: (g, 0)),
        ),
        compiler_params=pltpu.CompilerParams(
            dimension_semantics=("parallel",),   # v7x: shard token blocks over 2 TCs
            vmem_limit_bytes=vmem_limit,
        ),
        cost_estimate=pl.CostEstimate(
            flops=0,                             # pure gather — mem-bound
            transcendentals=0,
            bytes_accessed=table_bytes + 4 * N_pad + N_pad * D * itemsize,
        ),
    )(idx, weight)

    # (N_pad // k, k*D) row-major == (N_pad, D) row-major: free reshape.
    return out_packed.reshape(N_pad, D)[:N].reshape(B, S, D)


if __name__ == "__main__":
    # Module hyperparameters (small, consistent with the forward signature).
    vocab_size = 50
    embedding_dim = 32
    batch_size = 2
    seq_len = 8

    key = jax.random.PRNGKey(0)
    k_w, k_x = jax.random.split(key)

    # Deterministic parameter init: normal(mean=0, std=0.01), like the module.
    weight = 0.01 * jax.random.normal(
        k_w, (vocab_size, embedding_dim), dtype=jnp.float32)

    # Input token ids: (batch, seq), non-negative and < vocab_size.
    x = jax.random.randint(k_x, (batch_size, seq_len), 0, vocab_size,
                           dtype=jnp.int32)

    y = embedding_forward(x, weight)
    y = jax.block_until_ready(y)

    # Correctness check against the plain-JAX reference gather.
    y_ref = jnp.take(weight, x, axis=0)
    assert y.shape == (batch_size, seq_len, embedding_dim)
    assert jnp.allclose(y, y_ref), "Pallas embedding mismatch vs reference"

    print("KERNEL_OK")
</pallas_src>

<mosaic_0001>
module attributes {stable_mosaic.version = 11 : i64} {
  func.func @kernel(%arg0: i32, %arg1: memref<32xi32, #tpu.memory_space<smem>>, %arg2: memref<50x32xf32, #tpu.memory_space<vmem>>, %arg3: memref<8x128xf32, #tpu.memory_space<vmem>>) attributes {dimension_semantics = [#tpu.dimension_semantics<parallel>], iteration_bounds = array<i64: 1>, scalar_prefetch = 1 : i64, scratch_operands = 0 : i64, tpu.core_type = #tpu.core_type<tc>, window_params = [{pipeline_mode = #tpu.pipeline_mode<synchronous>, transform_indices = @transform_0, window_bounds = array<i64: 50, 32>}, {transform_indices = @transform_1, window_bounds = array<i64: 8, 128>}]} {
    %c32_i32 = arith.constant 32 : i32
    %0 = arith.muli %arg0, %c32_i32 : i32
    %c0_i32 = arith.constant 0 : i32
    %c8_i32 = arith.constant 8 : i32
    %1 = arith.addi %c0_i32, %c8_i32 : i32
    %c1_i32 = arith.constant 1 : i32
    scf.for %arg4 = %c0_i32 to %1 step %c1_i32  : i32 {
      %c4_i32 = arith.constant 4 : i32
      %2 = arith.muli %arg4, %c4_i32 : i32
      %3 = arith.addi %0, %2 : i32
      %c0_i32_1 = arith.constant 0 : i32
      %4 = arith.addi %3, %c0_i32_1 : i32
      %5 = arith.index_cast %4 : i32 to index
      %6 = memref.load %arg1[%5] : memref<32xi32, #tpu.memory_space<smem>>
      %7 = arith.index_cast %6 : i32 to index
      %c0 = arith.constant 0 : index
      %8 = vector.load %arg2[%7, %c0] : memref<50x32xf32, #tpu.memory_space<vmem>>, vector<1x32xf32>
      %c4_i32_2 = arith.constant 4 : i32
      %9 = arith.muli %arg4, %c4_i32_2 : i32
      %10 = arith.addi %0, %9 : i32
      %c1_i32_3 = arith.constant 1 : i32
      %11 = arith.addi %10, %c1_i32_3 : i32
      %12 = arith.index_cast %11 : i32 to index
      %13 = memref.load %arg1[%12] : memref<32xi32, #tpu.memory_space<smem>>
      %14 = arith.index_cast %13 : i32 to index
      %c0_4 = arith.constant 0 : index
      %15 = vector.load %arg2[%14, %c0_4] : memref<50x32xf32, #tpu.memory_space<vmem>>, vector<1x32xf32>
      %c4_i32_5 = arith.constant 4 : i32
      %16 = arith.muli %arg4, %c4_i32_5 : i32
      %17 = arith.addi %0, %16 : i32
      %c2_i32 = arith.constant 2 : i32
      %18 = arith.addi %17, %c2_i32 : i32
      %19 = arith.index_cast %18 : i32 to index
      %20 = memref.load %arg1[%19] : memref<32xi32, #tpu.memory_space<smem>>
      %21 = arith.index_cast %20 : i32 to index
      %c0_6 = arith.constant 0 : index
      %22 = vector.load %arg2[%21, %c0_6] : memref<50x32xf32, #tpu.memory_space<vmem>>, vector<1x32xf32>
      %c4_i32_7 = arith.constant 4 : i32
      %23 = arith.muli %arg4, %c4_i32_7 : i32
      %24 = arith.addi %0, %23 : i32
      %c3_i32 = arith.constant 3 : i32
      %25 = arith.addi %24, %c3_i32 : i32
      %26 = arith.index_cast %25 : i32 to index
      %27 = memref.load %arg1[%26] : memref<32xi32, #tpu.memory_space<smem>>
      %28 = arith.index_cast %27 : i32 to index
      %c0_8 = arith.constant 0 : index
      %29 = vector.load %arg2[%28, %c0_8] : memref<50x32xf32, #tpu.memory_space<vmem>>, vector<1x32xf32>
      %30 = tpu.concatenate %8, %15, %22, %29 in 1 : vector<1x32xf32>, vector<1x32xf32>, vector<1x32xf32>, vector<1x32xf32> -> vector<1x128xf32>
      %31 = arith.index_cast %arg4 : i32 to index
      %c0_9 = arith.constant 0 : index
      %32 = vector.load %arg3[%31, %c0_9] : memref<8x128xf32, #tpu.memory_space<vmem>>, vector<1x128xf32>
      tpu.vector_store %arg3[%31, %c0_9], %30 {strides = array<i32>} : memref<8x128xf32, #tpu.memory_space<vmem>>, vector<1x128xf32>,
    }
    %c8_i32_0 = arith.constant 8 : i32
    return
  }
  func.func @transform_0(%arg0: i32, %arg1: memref<32xi32, #tpu.memory_space<smem>>) -> (i32, i32) {
    %c0_i32 = arith.constant 0 : i32
    %c0_i32_0 = arith.constant 0 : i32
    %c0_i32_1 = arith.constant 0 : i32
    return %c0_i32, %c0_i32_0 : i32, i32
  }
  func.func @transform_1(%arg0: i32, %arg1: memref<32xi32, #tpu.memory_space<smem>>) -> (i32, i32) {
    %c0_i32 = arith.constant 0 : i32
    %c0_i32_0 = arith.constant 0 : i32
    return %arg0, %c0_i32 : i32, i32
  }
}

</mosaic_0001>

<bundles_post_ra>
// kernel: tpu_custom_call.1
= control target key start
LH: loop header
LB: loop body
LE: loop exit
PB: predicated region body
PF: predicated region fallthrough
CT: control target
= control target key end

     0   :  { %s190_s0 = inlined_call_operand.vmem [shape: s32[32], index: 0, kind: input, shape index: {}]   ;;  %s191_s1 = inlined_call_operand.vmem [shape: f32[50,32], index: 1, kind: input, shape index: {}]   ;;  %s192_s2 = inlined_call_operand.hbm [shape: f32[8,128], index: 2, kind: output, shape index: {}]  }
   0x1   :  { %s7_s11 = sshll.u32 %s190_s0, 4  ;;  %s8_s11 = int_to_ptr.vmem [resolvable:$true] %s7_s11 }
   0x2   :  { %s98_s12 = scalar_lea.vmem %s8_s11, 16  ;;  %p103_p1 = scmp.lt.s32.totalorder %s8_s11, %s8_s11 }
   0x3   :  { %p99_p0 = scmp.ne.s32.totalorder %s8_s11, %s98_s12  ;;  %p104_p2 = scmp.lt.s32.totalorder %s98_s12, %s98_s12 }
   0x5   :  { %p105_p3 = por %p104_p2, %p103_p1 }
   0x7   :  { %p106_p4 = pnand %p105_p3, %p99_p0 }
   0x9   :  { %109 = shalt.err (!%p106_p4)  }
   0xa   :  { %s142_s13 = smov [#allocation3]  }
   0xb   :  { %10 = dma.vmem_to_smem %s8_s11, 16, %s142_s13, [#allocation2] }
   0xc   :  { %134 = dma.done.wait [#allocation2], 16 }
   0xd   :  { %135 = vsyncadd [#allocation2], 4294967280 }
   0xe   :  { %12 = sfence }
   0xf   :  { %13 = vsyncpa [#allocation5], 0  ;;  %s165_s14 = smov 0  }
  0x10 LB: > { %s84_s0 = sshll.u32 %s140_s14, 2  ;;  %s143_s27 = smov 32   ;;  %vm52_vm0 = vcmask 261120   ;;  %vm54_vm1 = vcmask 523264   ;;  %vm56_vm2 = vcmask 785408   ;;  %s140_s14 = sphi %s165_s14, %s22_s14  }
  0x11   : > { %s28_s15 = sadd.s32 1, %s84_s0  ;;  %s32_s16 = sadd.s32 2, %s84_s0 }
  0x12   : > { %s29_s17 = sld [smem:[#allocation3 + %s28_s15]]  ;;  %s36_s18 = sadd.s32 3, %s84_s0 }
  0x13   : > { %s33_s19 = sld [smem:[#allocation3 + %s32_s16]]  ;;  %s144_s3 = smov 96  }
  0x14   : > { %s37_s20 = sld [smem:[#allocation3 + %s36_s18]]  ;;  %s145_s4 = smov 64  }
  0x15   : > { %s25_s5 = sld [smem:[#allocation3 + %s84_s0]]  ;;  %s58_s9 = scalar_lea.vmem [#allocation4], %s140_s14 }
  0x16   : > { %s22_s14 = sadd.s32 1, %s140_s14  }
  0x17   : > { %p19_p5 = scmp.ge.s32.totalorder %s22_s14, 8  }
  0x18   : > { %s30_s23 = scalar_lea.vmem %s191_s1, %s29_s17  ;;  %s146_s10 = smov (%p19_p5), [#allocation4]  }
  0x19   : > { %v31_v0 = vld [vmem:[%s30_s23] sm:$0x1]  ;;  %s34_s26 = scalar_lea.vmem %s191_s1, %s33_s19  ;;  %s66_s11 = sshll.u32 (%p19_p5), %s146_s10, 4  ;;  %s67_s11 = int_to_ptr.vmem [resolvable:$true] %s66_s11 }
  0x1a   : > { %41 = vrot.lane.b32.xlu0 %v31_v0, %s143_s27  ;;  %s38_s30 = scalar_lea.vmem %s191_s1, %s37_s20  ;;  %v35_v1 = vld [vmem:[%s34_s26] sm:$0x1]  ;;  %s110_s12 = scalar_lea.vmem (%p19_p5), %s67_s11, 128 }
  0x1b   : > { %v39_v2 = vld [vmem:[%s38_s30] sm:$0x1]  ;;  %s26_s8 = scalar_lea.vmem %s191_s1, %s25_s5  ;;  %p111_p6 = scmp.ne.s32.totalorder (%p19_p5), %s67_s11, %s110_s12 }
  0x1c   : > { %49 = vrot.lane.b32.xlu1 %v39_v2, %s144_s3  ;;  %v27_v4 = vld [vmem:[%s26_s8] sm:$0x1]  ;;  %p115_p7 = scmp.lt.s32.totalorder (%p19_p5), %s67_s11, %s67_s11  ;;  %p116_p8 = scmp.lt.s32.totalorder (%p19_p5), %s110_s12, %s110_s12 }
  0x1e   : > { %45 = vrot.lane.b32.xlu0 %v35_v1, %s145_s4  ;;  %p117_p9 = por (%p19_p5), %p116_p8, %p115_p7 }
  0x20   :  { %p118_p10 = pnand (%p19_p5), %p117_p9, %p111_p6 }
  0x8c   : > { %v42_v3 = vpop.permute.xlu0 %41 }
  0x8d   : > { %v53_v6 = vsel %vm52_vm0, %v27_v4, %v42_v3 }
  0x8e   : > { %v50_v5 = vpop.permute.xlu1 %49 }
  0x8f   :  { %21 = sbr.rel (!%p19_p5) target bundleno = 16 (0x10), region = 36 }
  0x90   : > { %v46_v7 = vpop.permute.xlu0 %45 }
  0x91   : > { %v55_v8 = vsel %vm54_vm1, %v53_v6, %v46_v7 }
  0x92   : > { %v57_v9 = vsel %vm56_vm2, %v55_v8, %v50_v5 }
  0x93   : > { %59 = vst [vmem:[%s58_s9] sm:$0x1] %v57_v9 }
  0x94   :  { %121 = shalt.err (!%p118_p10)
}
  0x95   :  { %69 = dma.vmem_to_hbm [thread:$0]  %s67_s11, 128, %s192_s2, [#allocation5]  }
  0x96   :  { %136 = dma.done.wait [#allocation5], 128  }
  0x97   :  { %137 = vsyncadd [#allocation5], 4294967168 }
  0x98   :  { %73 = vsyncpa [#allocation5], 1 }

</bundles_post_ra>
